<compile_context>
chip_gen: v7x
topology: tpu7x:2x2x1
jax: 0.10.0
libtpu: 0.0.40
codegen_flags: <defaults>
</compile_context>

<pallas_src>
import functools

import jax
import jax.numpy as jnp
from jax.experimental import pallas as pl
from jax.experimental.pallas import tpu as pltpu

NUM_JOINTS = 17
INPUT_DIM = 2
HIDDEN_DIM = 128
OUT_DIM = 128
PACKED_K = 64  # padded contraction dim: 3*J = 51 -> 64


def _round_up(x, m):
    return (x + m - 1) // m * m


def _choose_tiling(B):
    """Pick (tile_rows, padded_B).

    Single block for small/medium batches (no grid-step overhead, near-zero padding);
    for large batches an even number of <=1024-row tiles so the v7x megacore splits
    the ("parallel",) grid evenly across both TensorCores."""
    Bp = _round_up(max(B, 1), 16)
    if Bp < 1024:
        return Bp, Bp
    n_tiles = _round_up(-(-Bp // 1024), 2)       # even step count, ~1024 rows/tile
    TB = _round_up(-(-Bp // n_tiles), 16)        # TB <= 1024, multiple of 16
    return TB, TB * n_tiles


def _encoder_kernel(slab_ref, side_ref, mask_ref, w1_ref, b1_ref, w2_ref, b2_ref,
                    out_ref):
    # slab_ref : (TB, PK) bf16  lanes = [x - x_min (J) | y - y_min (J) | scores (J) | 0 pad]
    # side_ref : (TB, 8)  f32   lanes = [sx, sy, valid, 0, 0, 0, 0, 0]
    # mask_ref : (2, PK)  f32   row 0 = x-lane mask, row 1 = y-lane mask (VMEM-resident)
    # w1_ref   : (PK, H)  bf16  rows grouped [x.., y.., s..], zero rows on pad lanes
    # b1_ref   : (1, H)   f32
    # w2_ref   : (H, O)   bf16
    # b2_ref   : (1, O)   f32
    # out_ref  : (TB, O)  bf16
    slab = slab_ref[...].astype(jnp.float32)
    sx = side_ref[:, 0:1]                        # (TB, 1)
    sy = side_ref[:, 1:2]
    valid = side_ref[:, 2:3]
    is_x = mask_ref[0:1, :] > 0.5                # (1, PK) bool, broadcast over sublanes
    is_y = mask_ref[1:2, :] > 0.5

    # (v - min) * 1/(max - min + eps) on x/y lanes, identity on score/pad lanes.
    flat = jnp.where(is_x, slab * sx, jnp.where(is_y, slab * sy, slab))

    h = jnp.dot(flat.astype(jnp.bfloat16), w1_ref[...],
                preferred_element_type=jnp.float32) + b1_ref[...]
    h = jnp.maximum(h, 0.0)                                                # ReLU in f32
    feats = jnp.dot(h.astype(jnp.bfloat16), w2_ref[...],
                    preferred_element_type=jnp.float32) + b2_ref[...]

    # where (not multiply): invalid ("None") rows stay exactly 0 even if they carried NaN.
    out_ref[...] = jnp.where(valid > 0.5, feats, 0.0).astype(out_ref.dtype)


def init_params(key, num_joints=NUM_JOINTS, input_dim=INPUT_DIM,
                hidden_dim=HIDDEN_DIM, out_dim=OUT_DIM):
    """nn.Linear-style init. w1 rows follow PyTorch's interleaved flatten order
    [x0, y0, s0, x1, y1, s1, ...]."""
    in_dim = (input_dim + 1) * num_joints
    k1, k2, k3, k4 = jax.random.split(key, 4)
    b1lim = 1.0 / float(in_dim) ** 0.5
    b2lim = 1.0 / float(hidden_dim) ** 0.5
    w1 = jax.random.uniform(k1, (in_dim, hidden_dim), jnp.float32, -b1lim, b1lim)
    b1 = jax.random.uniform(k2, (hidden_dim,), jnp.float32, -b1lim, b1lim)
    w2 = jax.random.uniform(k3, (hidden_dim, out_dim), jnp.float32, -b2lim, b2lim)
    b2 = jax.random.uniform(k4, (out_dim,), jnp.float32, -b2lim, b2lim)
    return w1, b1, w2, b2


def prepare_params(w1, b1, w2, b2, num_joints=NUM_JOINTS, packed_k=PACKED_K):
    """One-time (outside jit) weight prep: permute W1 rows from interleaved
    [x0,y0,s0,...] to grouped [x.., y.., s..], zero-pad the contraction dim to
    `packed_k`, cast matmul weights to bf16, keep biases in f32."""
    J = num_joints
    in_dim = 3 * J
    assert w1.shape[0] == in_dim and packed_k >= in_dim
    j = jnp.arange(J)
    perm = jnp.concatenate([3 * j, 3 * j + 1, 3 * j + 2])
    w1g = jnp.zeros((packed_k, w1.shape[1]), jnp.float32).at[:in_dim].set(w1[perm])
    return (w1g.astype(jnp.bfloat16),
            b1.astype(jnp.float32)[None, :],
            w2.astype(jnp.bfloat16),
            b2.astype(jnp.float32)[None, :])


@functools.partial(jax.jit, static_argnames=("out_dtype",))
def batched_naive_mlp_encoder(kpts, scores, valid, w1g, b1, w2, b2,
                              out_dtype=jnp.bfloat16):
    """kpts: (B,J,2) f32, scores: (B,J) f32, valid: (B,) bool -> (B, out_dim).
    w1g/b1/w2/b2 come from prepare_params().  Output is bf16 by default (halves the
    kernel's HBM write traffic); pass out_dtype=jnp.float32 to match torch exactly."""
    B, J, _ = kpts.shape
    PK, H = w1g.shape
    O = w2.shape[1]

    # Per-row min/max + reciprocal ranges: tiny J=17 reductions that fuse into the
    # (memory-bound) packing pass below.
    x = kpts[:, :, 0]
    y = kpts[:, :, 1]
    x_min = jnp.min(x, axis=1, keepdims=True)
    x_max = jnp.max(x, axis=1, keepdims=True)
    y_min = jnp.min(y, axis=1, keepdims=True)
    y_max = jnp.max(y, axis=1, keepdims=True)
    eps = jnp.float32(1e-6)
    sx = 1.0 / (x_max - x_min + eps)
    sy = 1.0 / (y_max - y_min + eps)

    # bf16 data slab (one streaming DMA): [x - x_min | y - y_min | scores | zero pad].
    # Subtracting the minima here (in f32) keeps values in [0, range] so the bf16 cast
    # loses at most ~0.4% of the normalized coordinate (no cancellation in the kernel).
    pad_w = PK - 3 * J
    slab = jnp.concatenate(
        [x - x_min, y - y_min, scores, jnp.zeros((B, pad_w), jnp.float32)],
        axis=1).astype(jnp.bfloat16)                                        # (B, PK)

    # f32 per-row sidecar: [sx, sy, valid, 0...] -> (B, 8).
    side = jnp.concatenate(
        [sx, sy, valid.astype(jnp.float32)[:, None], jnp.zeros((B, 5), jnp.float32)],
        axis=1)

    # Lane-selection masks (constant-folded under jit, VMEM-resident in the kernel).
    lane = jnp.arange(PK)
    masks = jnp.stack([lane < J, (lane >= J) & (lane < 2 * J)]).astype(jnp.float32)

    TB, Bp = _choose_tiling(B)
    if Bp != B:  # pad rows are all-zero (sx = sy = valid = 0) -> finite, masked, sliced off
        slab = jnp.pad(slab, ((0, Bp - B), (0, 0)))
        side = jnp.pad(side, ((0, Bp - B), (0, 0)))

    out = pl.pallas_call(
        _encoder_kernel,
        out_shape=jax.ShapeDtypeStruct((Bp, O), out_dtype),
        grid_spec=pltpu.PrefetchScalarGridSpec(
            num_scalar_prefetch=0,
            grid=(Bp // TB,),
            in_specs=[
                pl.BlockSpec((TB, PK), lambda i: (i, 0)),   # bf16 slab: streamed
                pl.BlockSpec((TB, 8), lambda i: (i, 0)),    # f32 sidecar: streamed
                pl.BlockSpec((2, PK), lambda i: (0, 0)),    # lane masks: VMEM-resident
                pl.BlockSpec((PK, H), lambda i: (0, 0)),    # weights: VMEM-resident
                pl.BlockSpec((1, H), lambda i: (0, 0)),
                pl.BlockSpec((H, O), lambda i: (0, 0)),
                pl.BlockSpec((1, O), lambda i: (0, 0)),
            ],
            out_specs=pl.BlockSpec((TB, O), lambda i: (i, 0)),
        ),
        compiler_params=pltpu.CompilerParams(dimension_semantics=("parallel",)),
    )(slab, side, masks, w1g, b1, w2, b2)
    return out[:B]


def _reference(kpts, scores, valid, w1, b1, w2, b2):
    """Pure-JAX f32 transcription of the PyTorch forward (interleaved flatten)."""
    min_v = kpts.min(axis=1, keepdims=True)
    max_v = kpts.max(axis=1, keepdims=True)
    kn = (kpts - min_v) / (max_v - min_v + 1e-6)
    P = jnp.concatenate([kn, scores[..., None]], axis=-1)
    flat = P.reshape(P.shape[0], -1)
    h = jnp.maximum(flat @ w1 + b1, 0.0)
    feats = h @ w2 + b2
    return jnp.where(valid[:, None], feats, 0.0)


if __name__ == "__main__":
    key = jax.random.PRNGKey(0)
    pk, kk, sk = jax.random.split(key, 3)
    w1, b1, w2, b2 = init_params(pk)
    prepped = prepare_params(w1, b1, w2, b2)

    # --- small run: single tile, NaN garbage in the "None" detection row ---
    B = 16
    kpts = jax.random.uniform(kk, (B, NUM_JOINTS, INPUT_DIM), jnp.float32, 0.0, 256.0)
    scores = jax.random.uniform(sk, (B, NUM_JOINTS), jnp.float32)
    valid = jnp.arange(B) != 1                   # row 1 plays the role of a `None` detection
    kpts = jnp.where((~valid)[:, None, None], jnp.nan, kpts)
    scores = jnp.where((~valid)[:, None], jnp.nan, scores)

    out = jax.block_until_ready(batched_naive_mlp_encoder(kpts, scores, valid, *prepped))
    ref = _reference(kpts, scores, valid, w1, b1, w2, b2)
    assert out.shape == (B, OUT_DIM) and out.dtype == jnp.bfloat16
    assert jnp.all(out[1] == 0.0), "invalid (None) detection row must stay exactly zero"
    assert jnp.allclose(out.astype(jnp.float32), ref, atol=5e-2, rtol=5e-2), \
        "Pallas kernel mismatch vs reference"

    # --- larger run: exercises the even multi-tile grid + batch padding path ---
    B2 = 1040
    kk2, sk2 = jax.random.split(jax.random.PRNGKey(1))
    kpts2 = jax.random.uniform(kk2, (B2, NUM_JOINTS, INPUT_DIM), jnp.float32, 0.0, 256.0)
    scores2 = jax.random.uniform(sk2, (B2, NUM_JOINTS), jnp.float32)
    valid2 = (jnp.arange(B2) % 7) != 0
    out2 = jax.block_until_ready(
        batched_naive_mlp_encoder(kpts2, scores2, valid2, *prepped))
    ref2 = _reference(kpts2, scores2, valid2, w1, b1, w2, b2)
    assert out2.shape == (B2, OUT_DIM)
    assert jnp.all(out2[~valid2] == 0.0)
    assert jnp.allclose(out2.astype(jnp.float32), ref2, atol=5e-2, rtol=5e-2), \
        "Pallas kernel mismatch (tiled run)"

    print("KERNEL_OK")
</pallas_src>

<mosaic_0001>
module attributes {stable_mosaic.version = 11 : i64} {
  func.func @_encoder_kernel(%arg0: i32, %arg1: memref<16x64xbf16, #tpu.memory_space<vmem>>, %arg2: memref<16x8xf32, #tpu.memory_space<vmem>>, %arg3: memref<2x64xf32, #tpu.memory_space<vmem>>, %arg4: memref<64x128xbf16, #tpu.memory_space<vmem>>, %arg5: memref<1x128xf32, #tpu.memory_space<vmem>>, %arg6: memref<128x128xbf16, #tpu.memory_space<vmem>>, %arg7: memref<1x128xf32, #tpu.memory_space<vmem>>, %arg8: memref<16x128xbf16, #tpu.memory_space<vmem>>) attributes {dimension_semantics = [#tpu.dimension_semantics<parallel>], iteration_bounds = array<i64: 1>, scalar_prefetch = 0 : i64, scratch_operands = 0 : i64, tpu.core_type = #tpu.core_type<tc>, window_params = [{transform_indices = @transform_0, window_bounds = array<i64: 16, 64>}, {transform_indices = @transform_1, window_bounds = array<i64: 16, 8>}, {pipeline_mode = #tpu.pipeline_mode<synchronous>, transform_indices = @transform_2, window_bounds = array<i64: 2, 64>}, {pipeline_mode = #tpu.pipeline_mode<synchronous>, transform_indices = @transform_3, window_bounds = array<i64: 64, 128>}, {pipeline_mode = #tpu.pipeline_mode<synchronous>, transform_indices = @transform_4, window_bounds = array<i64: 1, 128>}, {pipeline_mode = #tpu.pipeline_mode<synchronous>, transform_indices = @transform_5, window_bounds = array<i64: 128, 128>}, {pipeline_mode = #tpu.pipeline_mode<synchronous>, transform_indices = @transform_6, window_bounds = array<i64: 1, 128>}, {transform_indices = @transform_7, window_bounds = array<i64: 16, 128>}]} {
    %c0 = arith.constant 0 : index
    %c0_0 = arith.constant 0 : index
    %0 = vector.load %arg1[%c0, %c0_0] : memref<16x64xbf16, #tpu.memory_space<vmem>>, vector<16x64xbf16>
    %1 = arith.extf %0 : vector<16x64xbf16> to vector<16x64xf32>
    %c0_1 = arith.constant 0 : index
    %c0_2 = arith.constant 0 : index
    %2 = vector.load %arg2[%c0_1, %c0_2] : memref<16x8xf32, #tpu.memory_space<vmem>>, vector<16x1xf32>
    %c0_3 = arith.constant 0 : index
    %c1 = arith.constant 1 : index
    %3 = vector.load %arg2[%c0_3, %c1] : memref<16x8xf32, #tpu.memory_space<vmem>>, vector<16x1xf32>
    %c0_4 = arith.constant 0 : index
    %c2 = arith.constant 2 : index
    %4 = vector.load %arg2[%c0_4, %c2] : memref<16x8xf32, #tpu.memory_space<vmem>>, vector<16x1xf32>
    %c0_5 = arith.constant 0 : index
    %c0_6 = arith.constant 0 : index
    %5 = vector.load %arg3[%c0_5, %c0_6] : memref<2x64xf32, #tpu.memory_space<vmem>>, vector<1x64xf32>
    %cst = arith.constant 5.000000e-01 : f32
    %6 = vector.broadcast %cst : f32 to vector<1x64xf32>
    %7 = arith.cmpf ogt, %5, %6 : vector<1x64xf32>
    %c1_7 = arith.constant 1 : index
    %c0_8 = arith.constant 0 : index
    %8 = vector.load %arg3[%c1_7, %c0_8] : memref<2x64xf32, #tpu.memory_space<vmem>>, vector<1x64xf32>
    %cst_9 = arith.constant 5.000000e-01 : f32
    %9 = vector.broadcast %cst_9 : f32 to vector<1x64xf32>
    %10 = arith.cmpf ogt, %8, %9 : vector<1x64xf32>
    %11 = vector.broadcast %2 : vector<16x1xf32> to vector<16x64xf32>
    %12 = arith.mulf %1, %11 : vector<16x64xf32>
    %13 = vector.broadcast %3 : vector<16x1xf32> to vector<16x64xf32>
    %14 = arith.mulf %1, %13 : vector<16x64xf32>
    %15 = vector.shape_cast %10 : vector<1x64xi1> to vector<1x64xi1>
    %16 = vector.broadcast %15 : vector<1x64xi1> to vector<16x64xi1>
    %17 = arith.select %16, %14, %1 : vector<16x64xi1>, vector<16x64xf32>
    %18 = vector.shape_cast %7 : vector<1x64xi1> to vector<1x64xi1>
    %19 = vector.broadcast %18 : vector<1x64xi1> to vector<16x64xi1>
    %20 = arith.select %19, %12, %17 : vector<16x64xi1>, vector<16x64xf32>
    %21 = arith.truncf %20 : vector<16x64xf32> to vector<16x64xbf16>
    %c0_10 = arith.constant 0 : index
    %c0_11 = arith.constant 0 : index
    %22 = vector.load %arg4[%c0_10, %c0_11] : memref<64x128xbf16, #tpu.memory_space<vmem>>, vector<64x128xbf16>
    %cst_12 = arith.constant dense<0.000000e+00> : vector<16x128xf32>
    %23 = tpu.matmul %21, %22, %cst_12 {dimension_numbers = #tpu.dot_dimension_numbers<[1], [0], [0], [1], [0, 0, 1, 1], [], []>} : vector<16x64xbf16>, vector<64x128xbf16>, vector<16x128xf32> -> vector<16x128xf32>
    %c0_13 = arith.constant 0 : index
    %c0_14 = arith.constant 0 : index
    %24 = vector.load %arg5[%c0_13, %c0_14] : memref<1x128xf32, #tpu.memory_space<vmem>>, vector<1x128xf32>
    %25 = vector.broadcast %24 : vector<1x128xf32> to vector<16x128xf32>
    %26 = arith.addf %23, %25 : vector<16x128xf32>
    %cst_15 = arith.constant 0.000000e+00 : f32
    %27 = vector.broadcast %cst_15 : f32 to vector<16x128xf32>
    %28 = arith.maximumf %26, %27 : vector<16x128xf32>
    %29 = arith.truncf %28 : vector<16x128xf32> to vector<16x128xbf16>
    %c0_16 = arith.constant 0 : index
    %c0_17 = arith.constant 0 : index
    %30 = vector.load %arg6[%c0_16, %c0_17] : memref<128x128xbf16, #tpu.memory_space<vmem>>, vector<128x128xbf16>
    %cst_18 = arith.constant dense<0.000000e+00> : vector<16x128xf32>
    %31 = tpu.matmul %29, %30, %cst_18 {dimension_numbers = #tpu.dot_dimension_numbers<[1], [0], [0], [1], [0, 0, 1, 1], [], []>} : vector<16x128xbf16>, vector<128x128xbf16>, vector<16x128xf32> -> vector<16x128xf32>
    %c0_19 = arith.constant 0 : index
    %c0_20 = arith.constant 0 : index
    %32 = vector.load %arg7[%c0_19, %c0_20] : memref<1x128xf32, #tpu.memory_space<vmem>>, vector<1x128xf32>
    %33 = vector.broadcast %32 : vector<1x128xf32> to vector<16x128xf32>
    %34 = arith.addf %31, %33 : vector<16x128xf32>
    %cst_21 = arith.constant 5.000000e-01 : f32
    %35 = vector.broadcast %cst_21 : f32 to vector<16x1xf32>
    %36 = arith.cmpf ogt, %4, %35 : vector<16x1xf32>
    %cst_22 = arith.constant 0.000000e+00 : f32
    %37 = vector.shape_cast %36 : vector<16x1xi1> to vector<16x1xi1>
    %38 = vector.broadcast %37 : vector<16x1xi1> to vector<16x128xi1>
    %39 = vector.broadcast %cst_22 : f32 to vector<16x128xf32>
    %40 = arith.select %38, %34, %39 : vector<16x128xi1>, vector<16x128xf32>
    %41 = arith.truncf %40 : vector<16x128xf32> to vector<16x128xbf16>
    %c0_23 = arith.constant 0 : index
    %c0_24 = arith.constant 0 : index
    %42 = vector.load %arg8[%c0_23, %c0_24] : memref<16x128xbf16, #tpu.memory_space<vmem>>, vector<16x128xbf16>
    tpu.vector_store %arg8[%c0_23, %c0_24], %41 {strides = array<i32>} : memref<16x128xbf16, #tpu.memory_space<vmem>>, vector<16x128xbf16>,
    return
  }
  func.func @transform_0(%arg0: i32) -> (i32, i32) {
    %c0_i32 = arith.constant 0 : i32
    %c0_i32_0 = arith.constant 0 : i32
    return %arg0, %c0_i32 : i32, i32
  }
  func.func @transform_1(%arg0: i32) -> (i32, i32) {
    %c0_i32 = arith.constant 0 : i32
    %c0_i32_0 = arith.constant 0 : i32
    return %arg0, %c0_i32 : i32, i32
  }
  func.func @transform_2(%arg0: i32) -> (i32, i32) {
    %c0_i32 = arith.constant 0 : i32
    %c0_i32_0 = arith.constant 0 : i32
    %c0_i32_1 = arith.constant 0 : i32
    return %c0_i32, %c0_i32_0 : i32, i32
  }
  func.func @transform_3(%arg0: i32) -> (i32, i32) {
    %c0_i32 = arith.constant 0 : i32
    %c0_i32_0 = arith.constant 0 : i32
    %c0_i32_1 = arith.constant 0 : i32
    return %c0_i32, %c0_i32_0 : i32, i32
  }
  func.func @transform_4(%arg0: i32) -> (i32, i32) {
    %c0_i32 = arith.constant 0 : i32
    %c0_i32_0 = arith.constant 0 : i32
    %c0_i32_1 = arith.constant 0 : i32
    return %c0_i32, %c0_i32_0 : i32, i32
  }
  func.func @transform_5(%arg0: i32) -> (i32, i32) {
    %c0_i32 = arith.constant 0 : i32
    %c0_i32_0 = arith.constant 0 : i32
    %c0_i32_1 = arith.constant 0 : i32
    return %c0_i32, %c0_i32_0 : i32, i32
  }
  func.func @transform_6(%arg0: i32) -> (i32, i32) {
    %c0_i32 = arith.constant 0 : i32
    %c0_i32_0 = arith.constant 0 : i32
    %c0_i32_1 = arith.constant 0 : i32
    return %c0_i32, %c0_i32_0 : i32, i32
  }
  func.func @transform_7(%arg0: i32) -> (i32, i32) {
    %c0_i32 = arith.constant 0 : i32
    %c0_i32_0 = arith.constant 0 : i32
    return %arg0, %c0_i32 : i32, i32
  }
}

</mosaic_0001>

<bundles_post_ra>
// kernel: batched_naive_mlp_encoder.1
= control target key start
LH: loop header
LB: loop body
LE: loop exit
PB: predicated region body
PF: predicated region fallthrough
CT: control target
= control target key end

     0   :  { %v438_v2 = vmov 1   ;;  %v439_v3 = vmov 0   ;;  %v440_v5 = vmov 0.0   ;;  %vm441_vm0 = vmmov 0   ;;  %s584_s0 = inlined_call_operand.vmem [shape: bf16[16,64], index: 0, kind: input, shape index: {}]   ;;  %s585_s1 = inlined_call_operand.vmem [shape: f32[16,8], index: 1, kind: input, shape index: {}]   ;;  %s586_s2 = inlined_call_operand.vmem [shape: f32[2,64], index: 2, kind: input, shape index: {}]   ;;  %s587_s3 = inlined_call_operand.vmem [shape: bf16[64,128], index: 3, kind: input, shape index: {}]   ;;  %s588_s4 = inlined_call_operand.vmem [shape: f32[1,128], index: 4, kind: input, shape index: {}]   ;;  %s589_s5 = inlined_call_operand.vmem [shape: bf16[128,128], index: 5, kind: input, shape index: {}]   ;;  %s590_s6 = inlined_call_operand.vmem [shape: f32[1,128], index: 6, kind: input, shape index: {}]   ;;  %s591_s7 = inlined_call_operand.hbm [shape: bf16[16,128], index: 7, kind: output, shape index: {}]  }
   0x1   :  { %v489_v0 = vld [vmem:[%s585_s1] sm:$0xff]  ;;  %398 = vset.pattern.permute.xlu0 %v438_v2  ;;  %399 = vset.pattern.permute.xlu1 %v439_v3  ;;  %v500_v4 = vld [vmem:[%s585_s1 + $0x8] sm:$0xff]  ;;  %v404_v7 = vld [vmem:[%s587_s3 + $0x10] sm:$0xff]  }
   0x2   :  { %v402_v1 = vld [vmem:[%s587_s3] sm:$0xff]   ;;  %40 = vperm.xlu1 %399, %v489_v0   ;;  %51 = vperm.xlu0 %398, %v489_v0   ;;  %v403_v6 = vld [vmem:[%s587_s3 + $0x8] sm:$0xff]   ;;  %v405_v8 = vld [vmem:[%s587_s3 + $0x18] sm:$0xff]  }
   0x3   :  { %358 = vmatprep.subr.bf16.mxu0 %v440_v5  ;;  %370 = vmatprep.subr.bf16.mxu1 %v440_v5  ;;  %v406_v9 = vld [vmem:[%s589_s5] sm:$0xff]   ;;  %v407_v10 = vld [vmem:[%s589_s5 + $0x8] sm:$0xff]  }
   0x4   :  { %359 = vmatpush3.bf16.msra.mxu0 %v402_v1  ;;  %366 = vmatprep.mubr.msk.bf16.mxu0 %vm441_vm0, %v440_v5 }
   0x5   :  { %360 = vmatprep.subr.bf16.mxu0 %v440_v5  ;;  %386 = vmatprep.mubr.msk.bf16.mxu1 %vm441_vm0, %v440_v5 }
   0x6   :  { %45 = vperm.xlu1 %399, %v500_v4   ;;  %55 = vperm.xlu0 %398, %v500_v4  }
   0x7   :  { %371 = vmatpush3.bf16.msra.mxu1 %v406_v9 }
   0x8   :  { %361 = vmatpush3.bf16.msra.mxu0 %v403_v6  ;;  %372 = vmatprep.subr.bf16.mxu1 %v440_v5 }
   0x9   :  { %362 = vmatprep.subr.bf16.mxu0 %v440_v5 }
   0xc   :  { %363 = vmatpush3.bf16.msra.mxu0 %v404_v7 }
   0xd   :  { %364 = vmatprep.subr.bf16.mxu0 %v440_v5 }
   0xe   :  { %12 = vsyncpa [#allocation3], 0  ;;  %373 = vmatpush3.bf16.msra.mxu1 %v407_v10  ;;  %v408_v11 = vld [vmem:[%s589_s5 + $0x10] sm:$0xff]   ;;  %v409_v12 = vld [vmem:[%s589_s5 + $0x18] sm:$0xff]   ;;  %v61_v15 = vlaneseq  ;;  %vm116_vm5 = vcmask 523264   ;;  %vm276_vm6 = vcmp.gt.f32.partialorder %v489_v0, 0.5 }
   0xf   :  { %374 = vmatprep.subr.bf16.mxu1 %v440_v5  ;;  %v410_v13 = vld [vmem:[%s589_s5 + $0x20] sm:$0xff]   ;;  %v411_v14 = vld [vmem:[%s589_s5 + $0x28] sm:$0xff]   ;;  %v412_v40 = vld [vmem:[%s589_s5 + $0x30] sm:$0xff]   ;;  %vm277_vm7 = vcmp.gt.f32.partialorder %v500_v4, 0.5  ;;  %v442_v42 = vmov 2   ;;  %v278_v43 = vsel %vm276_vm6, 1, %v439_v3 }
  0x10   :  { %365 = vmatpush3.bf16.msra.mxu0 %v405_v8  ;;  %v36_v16 = vld [vmem:[%s586_s2 + $0x1] sm:$0x1]  ;;  %v62_v17 = vshrl.u32 %v61_v15, 7  ;;  %v34_v18 = vld [vmem:[%s586_s2] sm:$0x1]  ;;  %v413_v41 = vld [vmem:[%s589_s5 + $0x38] sm:$0xff]   ;;  %400 = vset.pattern.permute.xlu0 %v442_v42 }
  0x11   :  { %vm37_vm1 = vcmp.gt.f32.partialorder %v36_v16, 0.5  ;;  %v336_v19 = vld [vmem:[%s584_s0] sm:$0xff]   ;;  %vm35_vm2 = vcmp.gt.f32.partialorder %v34_v18, 0.5  ;;  %401 = vset.pattern.permute.xlu1 %v442_v42  ;;  %v279_v44 = vsel %vm277_vm7, 1, %v439_v3  ;;  %281 = vperm.xlu0 %400, %v278_v43  }
  0x12   :  { %375 = vmatpush3.bf16.msra.mxu1 %v408_v11  ;;  %v63_v20 = vsub.s32 0, %v62_v17  ;;  %v60_v21 = vsel %vm37_vm1, 1, %v439_v3  ;;  %v337_v22 = vunpack.c.l.bf16 %v336_v19  ;;  %v68_v24 = vsel %vm35_vm2, 1, %v439_v3  ;;  %284 = vperm.xlu1 %401, %v279_v44   ;;  %v316_v45 = vld [vmem:[%s588_s4] ss:$0 sm:$0xff]  ;;  %s443_s4 = smov [#allocation2]  }
  0x13   :  { %376 = vmatprep.subr.bf16.mxu1 %v440_v5  ;;  %v338_v29 = vunpack.c.h.bf16 %v336_v19  ;;  %v322_v55 = vld [vmem:[%s590_s6] ss:$0 sm:$0xff]  ;;  %s305_s10 = sshll.u32 %s443_s4, 4  ;;  %s306_s10 = int_to_ptr.vmem [resolvable:$true] %s305_s10 }
  0x14   :  { %v64_v23 = vrot.slane %v60_v21, %v63_v20  ;;  %v72_v27 = vrot.slane %v68_v24, %v63_v20  ;;  %s414_s11 = scalar_lea.vmem %s306_s10, 128  ;;  %p419_p1 = scmp.lt.s32.totalorder %s306_s10, %s306_s10 }
  0x15   :  { %p415_p0 = scmp.ne.s32.totalorder %s306_s10, %s414_s11  ;;  %p420_p2 = scmp.lt.s32.totalorder %s414_s11, %s414_s11 }
  0x16   :  { %377 = vmatpush3.bf16.msra.mxu1 %v409_v12  ;;  %vm65_vm3 = vcmp.eq.s32.totalorder %v64_v23, 1  ;;  %vm73_vm4 = vcmp.eq.s32.totalorder %v72_v27, 1 }
  0x17   :  { %378 = vmatprep.subr.bf16.mxu1 %v440_v5  ;;  %p421_p3 = por %p420_p2, %p419_p1 }
  0x19   :  { %p422_p4 = pnand %p421_p3, %p415_p0 }
  0x1a   :  { %379 = vmatpush3.bf16.msra.mxu1 %v410_v13 }
  0x1b   :  { %380 = vmatprep.subr.bf16.mxu1 %v440_v5 }
  0x1e   :  { %381 = vmatpush3.bf16.msra.mxu1 %v411_v14 }
  0x1f   :  { %382 = vmatprep.subr.bf16.mxu1 %v440_v5 }
  0x22   :  { %383 = vmatpush3.bf16.msra.mxu1 %v412_v40 }
  0x23   :  { %384 = vmatprep.subr.bf16.mxu1 %v440_v5 }
  0x26   :  { %385 = vmatpush3.bf16.msra.mxu1 %v413_v41 }
  0x81   :  { %v41_v25 = vpop.permute.xlu1 %40  ;;  %v52_v26 = vpop.permute.xlu0 %51 }
  0x82   :  { %v58_v28 = vmul.f32 %v337_v22, %v52_v26  ;;  %v48_v30 = vmul.f32 %v337_v22, %v41_v25 }
  0x84   :  { %v66_v33 = vsel %vm65_vm3, %v58_v28, %v337_v22 }
  0x85   :  { %v46_v31 = vpop.permute.xlu1 %45  ;;  %v56_v32 = vpop.permute.xlu0 %55  ;;  %v74_v37 = vsel %vm73_vm4, %v48_v30, %v66_v33 }
  0x86   :  { %v49_v34 = vmul.f32 %v338_v29, %v46_v31  ;;  %v59_v35 = vmul.f32 %v338_v29, %v56_v32 }
  0x88   :  { %v67_v36 = vsel %vm65_vm3, %v59_v35, %v338_v29 }
  0x89   :  { %v75_v38 = vsel %vm73_vm4, %v49_v34, %v67_v36 }
  0x8a   :  { %v76_v39 = vpack.c.bf16 %v75_v38, %v74_v37 }
  0x8c   :  { %367 = vmatmul.mubr.msk.bf16.vlgmr.msra.gmra.mrb[0].mxu0 %vm116_vm5, %v76_v39 }
  0x90   :  { %v282_v56 = vpop.permute.xlu0 %281 }
  0x91   :  { %v285_v57 = vpop.permute.xlu1 %284  ;;  %vm286_vm8 = vcmp.eq.s32.totalorder %v282_v56, 1 }
  0x92   :  { %vm287_vm9 = vcmp.eq.s32.totalorder %v285_v57, 1 }
 0x15f   :  { %v154_v46 = vpop.f32.mrb[0].mxu0 }
 0x160   :  { %v155_v47 = vadd.f32 %v316_v45, %v154_v46  ;;  %v368_v48 = vpop.f32.mrb[1].mxu0 }
 0x161   :  { %v157_v49 = vpop.f32.mrb[2].mxu0 }
 0x162   :  { %v158_v50 = vadd.f32 %v316_v45, %v157_v49  ;;  %v369_v51 = vpop.f32.mrb[3].mxu0  ;;  %v161_v52 = vmax.f32 %v155_v47, 0.0 }
 0x164   :  { %v162_v53 = vmax.f32 %v158_v50, 0.0 }
 0x166   :  { %v163_v54 = vpack.c.bf16 %v162_v53, %v161_v52 }
 0x168   :  { %387 = vmatmul.mubr.bf16.vlgmr.msra.gmra.mrb[0].mxu1 %v163_v54 }
 0x23b   :  { %v269_v58 = vpop.f32.mrb[0].mxu1 }
 0x23c   :  { %v270_v59 = vadd.f32 %v322_v55, %v269_v58  ;;  %v388_v60 = vpop.f32.mrb[1].mxu1 }
 0x23d   :  { %v272_v61 = vpop.f32.mrb[2].mxu1 }
 0x23e   :  { %v273_v62 = vadd.f32 %v322_v55, %v272_v61  ;;  %v389_v63 = vpop.f32.mrb[3].mxu1  ;;  %v288_v0 = vsel %vm286_vm8, %v270_v59, 0.0 }
 0x240   :  { %v289_v1 = vsel %vm287_vm9, %v273_v62, 0.0 }
 0x241   :  { %v342_v2 = vpack.c.bf16 %v289_v1, %v288_v0 }
 0x243   :  { %343 = vst [vmem:[#allocation2] sm:$0xff] %v342_v2  }
 0x244   :  { %425 = shalt.err (!%p422_p4)
}
 0x245   :  { %s426_s13 = scalar_lea.hbm %s591_s7, 128 }
 0x246   :  { %p427_p5 = scmp.ne.s32.totalorder %s591_s7, %s426_s13  ;;  %p430_p6 = scmp.lt.u32.totalorder %s426_s13, %s591_s7 }
 0x248   :  { %p432_p7 = pnand %p430_p6, %p427_p5 }
 0x24a   :  { %435 = shalt.err (!%p432_p7)
}
 0x24b   :  { %s444_s3 = smov 64   ;;  %s445_s18 = smov 4  }
 0x24c   :  { %311 = dma.vmem_to_hbm [thread:$0]  %s306_s10, 128, %s591_s7, [#allocation3], %s444_s3, %s444_s3, %s445_s18  }
 0x24d   :  { %436 = dma.done.wait [#allocation3], 128  }
 0x24e   :  { %437 = vsyncadd [#allocation3], 4294967168 }
 0x24f   :  { %315 = vsyncpa [#allocation3], 1 }

</bundles_post_ra>
